<compile_context>
chip_gen: v5e
topology: v5e:2x2
jax: 0.10.0
libtpu: 0.0.40
codegen_flags: <defaults>
</compile_context>

<pallas_src>
import functools

import jax
import jax.numpy as jnp
from jax import lax
from jax.experimental import pallas as pl
from jax.experimental.pallas import tpu as pltpu


def _gram_kernel(x_ref, gram_ref, chan_ref, *, channel, hw, tk, d_total,
                 num_k, nk_per, batch, mask_tail, has_pad):
    """Accumulates a partial Gram [B, B] and channel-sum [B, 1] per D-split."""
    s = pl.program_id(0)                  # TensorCore split (parallel axis)
    k = pl.program_id(1)                  # K-reduction step (arbitrary, last)
    kg = s * nk_per + k                   # global K-tile index

    @pl.when(k == 0)
    def _init():
        gram_ref[...] = jnp.zeros_like(gram_ref)
        chan_ref[...] = jnp.zeros_like(chan_ref)

    def _accumulate():
        x = x_ref[...]                    # [B, TK], native dtype (no f32 cast)
        if mask_tail:
            # Tail tile: zero columns past D so they contribute nothing.
            col = kg * tk + lax.broadcasted_iota(jnp.int32, (batch, tk), 1)
            x = jnp.where(col < d_total, x, jnp.zeros_like(x))

        # Gram accumulate: gram[i, j] += <x_i_tile, x_j_tile> (MXU, f32 acc).
        gram_ref[...] += lax.dot_general(
            x, x, (((1,), (1,)), ((), ())), preferred_element_type=jnp.float32)

        def _chan_accumulate():
            # Channel (or total) sum folded onto the MXU: x @ mask_col -> [B,1].
            col1 = kg * tk + lax.broadcasted_iota(jnp.int32, (tk, 1), 0)
            if channel == -1:
                m = jnp.ones((tk, 1), dtype=x.dtype)   # x already tail-masked
            else:
                w = (col1 >= channel * hw) & (col1 < (channel + 1) * hw)
                m = w.astype(x.dtype)
            chan_ref[...] += lax.dot_general(
                x, m, (((1,), (0,)), ((), ())),
                preferred_element_type=jnp.float32)

        if channel == -1:
            _chan_accumulate()
        else:
            # The channel window [channel*hw, (channel+1)*hw) touches at most
            # ceil(hw/tk)+1 tiles; skip the mask build + dot everywhere else.
            lo, hi = channel * hw, (channel + 1) * hw
            overlap = jnp.logical_and(kg * tk < hi, (kg + 1) * tk > lo)
            pl.when(overlap)(_chan_accumulate)

    if has_pad:
        # Virtual padding tiles (only when num_k % n_split != 0): skip compute.
        pl.when(kg < num_k)(_accumulate)
    else:
        _accumulate()


def _pick_tiling(batch, d_total, dtype, block_k):
    """Generation-aware K-tile size and scoped-VMEM limit."""
    dtype_bytes = jnp.dtype(dtype).itemsize
    sublane = max(8, 32 // max(dtype_bytes, 1))        # 8 f32, 16 bf16, 32 i8
    b_pad = max(sublane, -(-batch // sublane) * sublane)

    try:
        vmem_cap = int(pltpu.get_tpu_info().vmem_capacity_bytes)
    except Exception:
        vmem_cap = 64 << 20                            # conservative (v7x)
    # 3/4 of physical VMEM, capped at 100 MiB (v5e/v6e default scoped limits of
    # 16/32 MiB would otherwise reject the enlarged double-buffered input).
    vmem_limit = min((vmem_cap * 3) // 4, 100 << 20)

    headroom = (8 << 20) + 4 * b_pad * b_pad * 4       # outputs + slack
    tk_cap = (vmem_limit - headroom) // (2 * b_pad * dtype_bytes)
    tk_cap = max(128, (tk_cap // 128) * 128)
    # Safeguard for very large B: grow the limit instead of underflowing.
    vmem_limit = max(vmem_limit, 2 * b_pad * tk_cap * dtype_bytes + headroom)

    if block_k is not None:                            # explicit override
        bk = max(128, (int(block_k) // 128) * 128)
        tk = d_total if d_total <= bk else min(bk, tk_cap)
    elif d_total <= tk_cap:
        tk = d_total                                   # single K tile
    else:
        tk = tk_cap
        if d_total % tk != 0:
            # Prefer a tile that divides D (kills the per-step tail mask) as
            # long as it stays within 2x of the budget-sized tile.
            for cand in range(tk_cap, tk_cap // 2, -128):
                if d_total % cand == 0:
                    tk = cand
                    break
    return tk, int(vmem_limit)


def simple_dream_loss_hook_diverse(output_nchw, *, channel=0,
                                   penalty_strength=100.0, neuron=False,
                                   block_k=None, num_splits=2):
    """Computes the scalar `self.loss` of SimpleDreamLossHookDiverse.forward."""
    x = output_nchw
    if neuron:
        # extract_neuron (plain JAX glue).  Note the torch code names the
        # H-centre `x` and the W-centre `y` and slices dim2 with y, dim3 with x.
        xc = x.shape[2] // 2
        yc = x.shape[3] // 2
        x = x[:, :, yc:yc + 1, xc:xc + 1]

    B, C, H, W = x.shape
    D = C * H * W
    hw = H * W
    x_flat = x.reshape(B, D)              # native dtype, [B, D] row-major

    tk, vmem_limit = _pick_tiling(B, D, x_flat.dtype, block_k)
    num_k = pl.cdiv(D, tk)
    mask_tail = (D % tk) != 0

    # 2-way split of the D reduction; free on 1-TC chips, ~2x on 2-TC (v7x).
    n_split = 2 if (num_splits >= 2 and num_k >= 2) else 1
    nk_per = pl.cdiv(num_k, n_split)
    has_pad = (n_split * nk_per) > num_k

    if has_pad:
        # Clamp the block index for the (at most one) virtual padding tile;
        # its compute is skipped inside the kernel.
        x_map = lambda s, k: (0, jnp.minimum(s * nk_per + k, num_k - 1))
    else:
        x_map = lambda s, k: (0, s * nk_per + k)

    kernel = functools.partial(
        _gram_kernel,
        channel=int(channel), hw=hw, tk=tk, d_total=D, num_k=num_k,
        nk_per=nk_per, batch=B, mask_tail=mask_tail, has_pad=has_pad)

    dtype_bytes = jnp.dtype(x_flat.dtype).itemsize
    cost = pl.CostEstimate(
        flops=2 * B * B * D + 2 * B * D,
        transcendentals=0,
        bytes_accessed=B * D * dtype_bytes + n_split * (B * B + B) * 4)

    gram_parts, chan_parts = pl.pallas_call(
        kernel,
        out_shape=(jax.ShapeDtypeStruct((n_split, B, B), jnp.float32),
                   jax.ShapeDtypeStruct((n_split, B, 1), jnp.float32)),
        grid_spec=pltpu.PrefetchScalarGridSpec(
            num_scalar_prefetch=0,
            grid=(n_split, nk_per),
            in_specs=[pl.BlockSpec((B, tk), x_map)],
            out_specs=[pl.BlockSpec((None, B, B), lambda s, k: (s, 0, 0)),
                       pl.BlockSpec((None, B, 1), lambda s, k: (s, 0, 0))],
        ),
        compiler_params=pltpu.CompilerParams(
            dimension_semantics=("parallel", "arbitrary"),
            vmem_limit_bytes=int(vmem_limit)),
        cost_estimate=cost,
    )(x_flat)

    # O(B^2) finalize in plain JAX (negligible next to the O(B^2 * D) Gram).
    gram = jnp.sum(gram_parts, axis=0)                      # [B, B]
    chan_sum = jnp.sum(chan_parts)                          # scalar
    diag = jnp.diagonal(gram)                               # ||x_i||^2
    norms = jnp.sqrt(diag)
    # torch.cosine_similarity clamps the *product* of norms at eps = 1e-8.
    # (Recent ATen clamps each norm separately; differs only for ~zero rows.)
    denom = jnp.maximum(norms[:, None] * norms[None, :], jnp.float32(1e-8))
    cos = gram / denom
    pair_sum = jnp.sum(cos) - jnp.sum(jnp.diagonal(cos))    # ordered pairs i!=j
    n_sel = B * (D if channel == -1 else hw)
    loss_term = -chan_sum / jnp.float32(n_sel)
    # loss_term - penalty * diversity, with diversity = -pair_sum / B
    return loss_term + jnp.float32(penalty_strength) * pair_sum / jnp.float32(B)


def _reference_loss(output_nchw, *, channel=0, penalty_strength=100.0):
    """Pure-JAX reference mirroring the PyTorch hook (for self-check)."""
    x = output_nchw.astype(jnp.float32)
    B = x.shape[0]
    flat = x.reshape(B, -1)
    norms = jnp.linalg.norm(flat, axis=1)
    gram = flat @ flat.T
    denom = jnp.maximum(norms[:, None] * norms[None, :], 1e-8)
    cos = gram / denom
    pair_sum = jnp.sum(cos) - jnp.sum(jnp.diag(cos))
    diversity = -pair_sum / B
    if channel == -1:
        loss_term = -jnp.mean(x)
    else:
        loss_term = -jnp.mean(x[:, channel])
    return loss_term - penalty_strength * diversity


if __name__ == "__main__":
    key = jax.random.PRNGKey(0)
    B, C, H, W = 2, 4, 16, 16
    output = jax.random.normal(key, (B, C, H, W), dtype=jnp.float32)

    ref = _reference_loss(output, channel=0, penalty_strength=100.0)

    # 1) Default tiling: VMEM-budget tile covers D -> single K tile, no split.
    loss = simple_dream_loss_hook_diverse(output, channel=0,
                                          penalty_strength=100.0)
    loss = jax.block_until_ready(loss)
    assert jnp.allclose(loss, ref, rtol=1e-4, atol=1e-4), (loss, ref)

    # 2) Forced K tiling, even split across the parallel axis (tk=256 -> 4 tiles).
    loss_t = simple_dream_loss_hook_diverse(output, channel=0, block_k=256)
    loss_t = jax.block_until_ready(loss_t)
    assert jnp.allclose(loss_t, ref, rtol=1e-4, atol=1e-4), (loss_t, ref)

    # 3) Odd tile count + partial tail tile (tk=384 -> 3 tiles, one padded/clamped).
    loss_p = simple_dream_loss_hook_diverse(output, channel=0, block_k=384)
    loss_p = jax.block_until_ready(loss_p)
    assert jnp.allclose(loss_p, ref, rtol=1e-4, atol=1e-4), (loss_p, ref)

    # 4) Tiled, no core split (num_splits=1).
    loss_1 = simple_dream_loss_hook_diverse(output, channel=0, block_k=256,
                                            num_splits=1)
    loss_1 = jax.block_until_ready(loss_1)
    assert jnp.allclose(loss_1, ref, rtol=1e-4, atol=1e-4), (loss_1, ref)

    # 5) channel == -1 path (mean over the whole activation).
    ref_all = _reference_loss(output, channel=-1, penalty_strength=100.0)
    loss_a = simple_dream_loss_hook_diverse(output, channel=-1, block_k=256)
    loss_a = jax.block_until_ready(loss_a)
    assert jnp.allclose(loss_a, ref_all, rtol=1e-4, atol=1e-4), (loss_a, ref_all)

    # 6) Native bf16 activations (kernel DMAs/matmuls in bf16, accumulates f32).
    out_bf16 = output.astype(jnp.bfloat16)
    ref_b = _reference_loss(out_bf16, channel=0, penalty_strength=100.0)
    loss_b = simple_dream_loss_hook_diverse(out_bf16, channel=0, block_k=256)
    loss_b = jax.block_until_ready(loss_b)
    assert jnp.allclose(loss_b, ref_b, rtol=2e-2, atol=2e-2), (loss_b, ref_b)

    # 7) neuron=True path (centre-pixel extraction, D = C).
    ref_n = _reference_loss(output[:, :, 8:9, 8:9], channel=0,
                            penalty_strength=100.0)
    loss_n = simple_dream_loss_hook_diverse(output, channel=0, neuron=True)
    loss_n = jax.block_until_ready(loss_n)
    assert jnp.allclose(loss_n, ref_n, rtol=1e-4, atol=1e-4), (loss_n, ref_n)

    print("KERNEL_OK")
</pallas_src>

<mosaic_0001>
module attributes {stable_mosaic.version = 11 : i64} {
  func.func @_gram_kernel(%arg0: i32, %arg1: i32, %arg2: memref<2x1024xf32, #tpu.memory_space<vmem>>, %arg3: memref<1x2x2xf32, #tpu.memory_space<vmem>>, %arg4: memref<1x2x1xf32, #tpu.memory_space<vmem>>) attributes {dimension_semantics = [#tpu.dimension_semantics<parallel>, #tpu.dimension_semantics<arbitrary>], iteration_bounds = array<i64: 1, 1>, scalar_prefetch = 0 : i64, scratch_operands = 0 : i64, tpu.core_type = #tpu.core_type<tc>, window_params = [{transform_indices = @transform_0, window_bounds = array<i64: 2, 1024>}, {transform_indices = @transform_1, window_bounds = array<i64: 1, 2, 2>}, {transform_indices = @transform_2, window_bounds = array<i64: 1, 2, 1>}]} {
    %c1_i32 = arith.constant 1 : i32
    %0 = arith.muli %arg0, %c1_i32 : i32
    %1 = arith.addi %0, %arg1 : i32
    %c0_i32 = arith.constant 0 : i32
    %2 = arith.cmpi eq, %arg1, %c0_i32 : i32
    %3 = arith.extui %2 : i1 to i32
    %c0_i32_0 = arith.constant 0 : i32
    %4 = arith.cmpi ne, %3, %c0_i32_0 : i32
    scf.if %4 {
      %cst_12 = arith.constant 0.000000e+00 : f32
      %21 = vector.broadcast %cst_12 : f32 to vector<2x2xf32>
      %c0_13 = arith.constant 0 : index
      %c0_14 = arith.constant 0 : index
      %c0_15 = arith.constant 0 : index
      %22 = vector.load %arg3[%c0_13, %c0_14, %c0_15] : memref<1x2x2xf32, #tpu.memory_space<vmem>>, vector<1x2x2xf32>
      %23 = vector.shape_cast %22 : vector<1x2x2xf32> to vector<2x2xf32>
      %24 = vector.shape_cast %21 : vector<2x2xf32> to vector<1x2x2xf32>
      tpu.vector_store %arg3[%c0_13, %c0_14, %c0_15], %24 {strides = array<i32>} : memref<1x2x2xf32, #tpu.memory_space<vmem>>, vector<1x2x2xf32>,
      %cst_16 = arith.constant 0.000000e+00 : f32
      %25 = vector.broadcast %cst_16 : f32 to vector<2x1xf32>
      %c0_17 = arith.constant 0 : index
      %c0_18 = arith.constant 0 : index
      %c0_19 = arith.constant 0 : index
      %26 = vector.load %arg4[%c0_17, %c0_18, %c0_19] : memref<1x2x1xf32, #tpu.memory_space<vmem>>, vector<1x2x1xf32>
      %27 = vector.shape_cast %26 : vector<1x2x1xf32> to vector<2x1xf32>
      %28 = vector.shape_cast %25 : vector<2x1xf32> to vector<1x2x1xf32>
      tpu.vector_store %arg4[%c0_17, %c0_18, %c0_19], %28 {strides = array<i32>} : memref<1x2x1xf32, #tpu.memory_space<vmem>>, vector<1x2x1xf32>,
    } else {
    }
    %c0 = arith.constant 0 : index
    %c0_1 = arith.constant 0 : index
    %5 = vector.load %arg2[%c0, %c0_1] : memref<2x1024xf32, #tpu.memory_space<vmem>>, vector<2x1024xf32>
    %c0_2 = arith.constant 0 : index
    %c0_3 = arith.constant 0 : index
    %c0_4 = arith.constant 0 : index
    %6 = vector.load %arg3[%c0_2, %c0_3, %c0_4] : memref<1x2x2xf32, #tpu.memory_space<vmem>>, vector<1x2x2xf32>
    %7 = vector.shape_cast %6 : vector<1x2x2xf32> to vector<2x2xf32>
    %cst = arith.constant dense<0.000000e+00> : vector<2x2xf32>
    %8 = tpu.matmul %5, %5, %cst {dimension_numbers = #tpu.dot_dimension_numbers<[1], [1], [0], [0], [0, 0, 1, 0], [], []>} : vector<2x1024xf32>, vector<2x1024xf32>, vector<2x2xf32> -> vector<2x2xf32>
    %9 = arith.addf %7, %8 : vector<2x2xf32>
    %c0_5 = arith.constant 0 : index
    %c0_6 = arith.constant 0 : index
    %c0_7 = arith.constant 0 : index
    %10 = vector.load %arg3[%c0_5, %c0_6, %c0_7] : memref<1x2x2xf32, #tpu.memory_space<vmem>>, vector<1x2x2xf32>
    %11 = vector.shape_cast %10 : vector<1x2x2xf32> to vector<2x2xf32>
    %12 = vector.shape_cast %9 : vector<2x2xf32> to vector<1x2x2xf32>
    tpu.vector_store %arg3[%c0_5, %c0_6, %c0_7], %12 {strides = array<i32>} : memref<1x2x2xf32, #tpu.memory_space<vmem>>, vector<1x2x2xf32>,
    %c1024_i32 = arith.constant 1024 : i32
    %13 = arith.muli %1, %c1024_i32 : i32
    %c256_i32 = arith.constant 256 : i32
    %14 = arith.cmpi slt, %13, %c256_i32 : i32
    %c1_i32_8 = arith.constant 1 : i32
    %15 = arith.addi %1, %c1_i32_8 : i32
    %c1024_i32_9 = arith.constant 1024 : i32
    %16 = arith.muli %15, %c1024_i32_9 : i32
    %c0_i32_10 = arith.constant 0 : i32
    %17 = arith.cmpi sgt, %16, %c0_i32_10 : i32
    %18 = arith.andi %14, %17 : i1
    %19 = arith.extui %18 : i1 to i32
    %c0_i32_11 = arith.constant 0 : i32
    %20 = arith.cmpi ne, %19, %c0_i32_11 : i32
    scf.if %20 {
      %c1024_i32_12 = arith.constant 1024 : i32
      %21 = arith.muli %1, %c1024_i32_12 : i32
      %22 = tpu.iota {dimensions = array<i32: 0>} : vector<1024x1xi32>
      %23 = vector.broadcast %21 : i32 to vector<1024x1xi32>
      %24 = arith.addi %23, %22 : vector<1024x1xi32>
      %c0_i32_13 = arith.constant 0 : i32
      %25 = vector.broadcast %c0_i32_13 : i32 to vector<1024x1xi32>
      %26 = arith.cmpi sge, %24, %25 : vector<1024x1xi32>
      %c256_i32_14 = arith.constant 256 : i32
      %27 = vector.broadcast %c256_i32_14 : i32 to vector<1024x1xi32>
      %28 = arith.cmpi slt, %24, %27 : vector<1024x1xi32>
      %29 = arith.andi %26, %28 : vector<1024x1xi1>
      %30 = arith.extui %29 : vector<1024x1xi1> to vector<1024x1xi32>
      %31 = arith.sitofp %30 : vector<1024x1xi32> to vector<1024x1xf32>
      %c0_15 = arith.constant 0 : index
      %c0_16 = arith.constant 0 : index
      %c0_17 = arith.constant 0 : index
      %32 = vector.load %arg4[%c0_15, %c0_16, %c0_17] : memref<1x2x1xf32, #tpu.memory_space<vmem>>, vector<1x2x1xf32>
      %33 = vector.shape_cast %32 : vector<1x2x1xf32> to vector<2x1xf32>
      %cst_18 = arith.constant dense<0.000000e+00> : vector<2x1xf32>
      %34 = tpu.matmul %5, %31, %cst_18 {dimension_numbers = #tpu.dot_dimension_numbers<[1], [0], [0], [1], [0, 0, 1, 1], [], []>} : vector<2x1024xf32>, vector<1024x1xf32>, vector<2x1xf32> -> vector<2x1xf32>
      %35 = arith.addf %33, %34 : vector<2x1xf32>
      %c0_19 = arith.constant 0 : index
      %c0_20 = arith.constant 0 : index
      %c0_21 = arith.constant 0 : index
      %36 = vector.load %arg4[%c0_19, %c0_20, %c0_21] : memref<1x2x1xf32, #tpu.memory_space<vmem>>, vector<1x2x1xf32>
      %37 = vector.shape_cast %36 : vector<1x2x1xf32> to vector<2x1xf32>
      %38 = vector.shape_cast %35 : vector<2x1xf32> to vector<1x2x1xf32>
      tpu.vector_store %arg4[%c0_19, %c0_20, %c0_21], %38 {strides = array<i32>} : memref<1x2x1xf32, #tpu.memory_space<vmem>>, vector<1x2x1xf32>,
    } else {
    }
    return
  }
  func.func @transform_0(%arg0: i32, %arg1: i32) -> (i32, i32) {
    %c1_i32 = arith.constant 1 : i32
    %0 = arith.muli %arg0, %c1_i32 : i32
    %1 = arith.addi %0, %arg1 : i32
    %c0_i32 = arith.constant 0 : i32
    %c0_i32_0 = arith.constant 0 : i32
    return %c0_i32, %1 : i32, i32
  }
  func.func @transform_1(%arg0: i32, %arg1: i32) -> (i32, i32, i32) {
    %c0_i32 = arith.constant 0 : i32
    %c0_i32_0 = arith.constant 0 : i32
    %c0_i32_1 = arith.constant 0 : i32
    return %arg0, %c0_i32, %c0_i32_0 : i32, i32, i32
  }
  func.func @transform_2(%arg0: i32, %arg1: i32) -> (i32, i32, i32) {
    %c0_i32 = arith.constant 0 : i32
    %c0_i32_0 = arith.constant 0 : i32
    %c0_i32_1 = arith.constant 0 : i32
    return %arg0, %c0_i32, %c0_i32_0 : i32, i32, i32
  }
}

</mosaic_0001>

<bundles_post_ra>
// kernel: tpu_custom_call.1
= control target key start
LH: loop header
LB: loop body
LE: loop exit
PB: predicated region body
PF: predicated region fallthrough
CT: control target
= control target key end

     0   :  { %8 = vsyncpa [#allocation3], 0  ;;  %s1459_s0 = inlined_call_operand.hbm [shape: f32[2,1024], index: 0, kind: input, shape index: {}]   ;;  %s1460_s1 = inlined_call_operand.hbm [shape: f32[1,2,2], index: 1, kind: output, shape index: {0}]   ;;  %s1461_s2 = inlined_call_operand.vmem [shape: f32[1,2,1], index: 2, kind: output, shape index: {1}]  }
   0x1   :  { %9 = vsyncpa [#allocation4], 0  ;;  %s19_s11 = sshll.u32 %s1459_s0, 4  ;;  %s1413_s12 = smov [#allocation2]   ;;  %s20_s11 = int_to_ptr.hbm [resolvable:$true] %s19_s11 }
   0x2   :  { %s21_s13 = sshll.u32 %s1413_s12, 4  ;;  %s22_s13 = int_to_ptr.vmem [resolvable:$true] %s21_s13 }
   0x3   :  { %24 = dma.hbm_to_vmem [thread:$0]  %s20_s11, 256, %s22_s13, [#allocation3]  }
   0x4   :  { %1409 = dma.done.wait [#allocation3], 256  }
   0x5   :  { %1410 = vsyncadd [#allocation3], 4294967040  ;;  %v40_v0 = vld [vmem:[#allocation2] sm:$0xff]  ;;  %v41_v1 = vld [vmem:[#allocation2 + $0x8] sm:$0xff]  ;;  %v1414_v18 = vmov 1.0   ;;  %v1415_v19 = vmov 0.0  }
   0x6   :  { %45 = vst [vmem:[#allocation1] ss:$4 sm:$0xff] %v40_v0  ;;  %vm36_vm0 = vcmask 9216   ;;  %vm38_vm1 = vcmask 1024   ;;  %s1416_s15 = smov [#allocation5]   ;;  %s1343_s19 = sshll.u32 %s1460_s1, 4  ;;  %s1344_s19 = int_to_ptr.hbm [resolvable:$true] %s1343_s19 }
   0x7   :  { %47 = vst [vmem:[#allocation1 + $0x20] ss:$4 sm:$0xff] %v41_v1  ;;  %s1341_s16 = sshll.u32 %s1416_s15, 4  ;;  %s1342_s16 = int_to_ptr.vmem [resolvable:$true] %s1341_s16 }
   0x8   :  { %37 = vst.msk [vmem:[#allocation5] sm:$0x3] %vm36_vm0, %v1415_v19 }
   0x9   :  { %39 = vst.msk [vmem:[%s1461_s2] sm:$0x3] %vm38_vm1, %v1415_v19 }
   0xd   :  { %v48_v2 = vld.sshfl [vmem:[#allocation1] sm:$0xff pattern:$0x73625140]  ;;  %v49_v3 = vld.sshfl [vmem:[#allocation1 + $0x8] sm:$0xff pattern:$0x73625140] }
   0xe   :  { %v50_v4 = vld.sshfl [vmem:[#allocation1 + $0x10] sm:$0xff pattern:$0x73625140]  ;;  %v51_v5 = vld.sshfl [vmem:[#allocation1 + $0x18] sm:$0xff pattern:$0x73625140] }
   0xf   :  { %64 = vst [vmem:[#allocation1] ss:$4 sm:$0xff] %v40_v0  ;;  %v52_v6 = vld.sshfl [vmem:[#allocation1 + $0x20] sm:$0xff pattern:$0x73625140] }
  0x10   :  { %v53_v7 = vld.sshfl [vmem:[#allocation1 + $0x28] sm:$0xff pattern:$0x73625140]  ;;  %v54_v8 = vld.sshfl [vmem:[#allocation1 + $0x30] sm:$0xff pattern:$0x73625140] }
  0x11   :  { %v55_v9 = vld.sshfl [vmem:[#allocation1 + $0x38] sm:$0xff pattern:$0x73625140]  ;;  %v1153_v59 = vld [vmem:[%s1461_s2] sm:$0x3] }
  0x12   :  { %66 = vst [vmem:[#allocation1 + $0x20] ss:$4 sm:$0xff] %v41_v1  ;;  %v42_v41 = vld [vmem:[#allocation5] sm:$0x3] }
  0x16   :  { %v67_v10 = vld.sshfl [vmem:[#allocation1] sm:$0xff pattern:$0x73625140]  ;;  %v68_v11 = vld.sshfl [vmem:[#allocation1 + $0x8] sm:$0xff pattern:$0x73625140] }
  0x17   :  { %98 = vmatpush.xpose.msra.mxu0 %v67_v10  ;;  %118 = vmatpush.xpose.msra.mxu1 %v68_v11  ;;  %v69_v12 = vld.sshfl [vmem:[#allocation1 + $0x10] sm:$0xff pattern:$0x73625140]  ;;  %v70_v13 = vld.sshfl [vmem:[#allocation1 + $0x18] sm:$0xff pattern:$0x73625140] }
  0x18   :  { %138 = vmatpush.xpose.msra.mxu2 %v69_v12  ;;  %158 = vmatpush.xpose.msra.mxu3 %v70_v13  ;;  %1154 = vst [vmem:[#allocation1] ss:$4 sm:$0xff] %v40_v0 }
  0x19   :  { %v71_v14 = vld.sshfl [vmem:[#allocation1 + $0x20] sm:$0xff pattern:$0x73625140]  ;;  %v72_v15 = vld.sshfl [vmem:[#allocation1 + $0x28] sm:$0xff pattern:$0x73625140] }
  0x1a   :  { %v73_v16 = vld.sshfl [vmem:[#allocation1 + $0x30] sm:$0xff pattern:$0x73625140]  ;;  %v74_v17 = vld.sshfl [vmem:[#allocation1 + $0x38] sm:$0xff pattern:$0x73625140]  ;;  %99 = vmatmul.f32.vlgmr.msra.gmra.mxu0 %v48_v2  ;;  %119 = vmatmul.f32.vlgmr.msra.gmra.mxu1 %v49_v3 }
  0x1b   :  { %178 = vmatpush.xpose.msrb.mxu0 %v71_v14  ;;  %198 = vmatpush.xpose.msrb.mxu1 %v72_v15  ;;  %1156 = vst [vmem:[#allocation1 + $0x20] ss:$4 sm:$0xff] %v41_v1 }
  0x1c   :  { %139 = vmatmul.f32.vlgmr.msra.gmra.mxu2 %v50_v4  ;;  %159 = vmatmul.f32.vlgmr.msra.gmra.mxu3 %v51_v5 }
  0x1d   :  { %218 = vmatpush.xpose.msrb.mxu2 %v73_v16  ;;  %238 = vmatpush.xpose.msrb.mxu3 %v74_v17 }
  0x1f   :  { %1173 = vmatpush.msra.mxu0 %v1414_v18  ;;  %1193 = vmatpush.msra.mxu1 %v1414_v18  ;;  %v1159_v20 = vld.sshfl [vmem:[#allocation1 + $0x10] sm:$0xff pattern:$0x73625140]  ;;  %v1160_v21 = vld.sshfl [vmem:[#allocation1 + $0x18] sm:$0xff pattern:$0x73625140] }
  0x20   :  { %v1157_v24 = vld.sshfl [vmem:[#allocation1] sm:$0xff pattern:$0x73625140]  ;;  %v1158_v25 = vld.sshfl [vmem:[#allocation1 + $0x8] sm:$0xff pattern:$0x73625140] }
  0x21   :  { %1174 = vmatpush.msra.mxu0 %v1414_v18  ;;  %1194 = vmatpush.msra.mxu1 %v1414_v18 }
  0x22   :  { %1228 = vmatpush.msra.mxu2 %v1415_v19  ;;  %1248 = vmatpush.msra.mxu3 %v1415_v19  ;;  %v1161_v22 = vld.sshfl [vmem:[#allocation1 + $0x20] sm:$0xff pattern:$0x73625140]  ;;  %v1162_v23 = vld.sshfl [vmem:[#allocation1 + $0x28] sm:$0xff pattern:$0x73625140] }
  0x23   :  { %1175 = vmatpush.msra.mxu0 %v1414_v18  ;;  %1195 = vmatpush.msra.mxu1 %v1414_v18  ;;  %v1163_v26 = vld.sshfl [vmem:[#allocation1 + $0x30] sm:$0xff pattern:$0x73625140]  ;;  %v1164_v27 = vld.sshfl [vmem:[#allocation1 + $0x38] sm:$0xff pattern:$0x73625140] }
  0x24   :  { %219 = vmatmul.f32.vlgmr.msrb.gmra.mxu2 %v54_v8  ;;  %199 = vmatmul.f32.vlgmr.msrb.gmra.mxu1 %v53_v7 }
  0x25   :  { %1176 = vmatpush.msra.mxu0 %v1414_v18  ;;  %1196 = vmatpush.msra.mxu1 %v1414_v18 }
  0x26   :  { %179 = vmatmul.f32.vlgmr.msrb.gmra.mxu0 %v52_v6  ;;  %239 = vmatmul.f32.vlgmr.msrb.gmra.mxu3 %v55_v9 }
  0x27   :  { %1177 = vmatpush.msra.mxu0 %v1414_v18  ;;  %1197 = vmatpush.msra.mxu1 %v1414_v18 }
  0x28   :  { %1268 = vmatpush.msrb.mxu2 %v1415_v19  ;;  %1288 = vmatpush.msrb.mxu3 %v1415_v19 }
  0x29   :  { %1178 = vmatpush.msra.mxu0 %v1414_v18  ;;  %1198 = vmatpush.msra.mxu1 %v1414_v18 }
  0x2b   :  { %1179 = vmatpush.msra.mxu0 %v1414_v18  ;;  %1199 = vmatpush.msra.mxu1 %v1414_v18 }
  0x2c   :  { %1229 = vmatmul.f32.vlgmr.msra.gmra.mxu2 %v1159_v20 }
  0x2d   :  { %1180 = vmatpush.msra.mxu0 %v1414_v18  ;;  %1200 = vmatpush.msra.mxu1 %v1414_v18 }
  0x2e   :  { %1308 = vmatpush.msra.mxu2 %v1415_v19  ;;  %1249 = vmatmul.f32.vlgmr.msra.gmra.mxu3 %v1160_v21 }
  0x2f   :  { %1181 = vmatpush.msra.mxu0 %v1414_v18  ;;  %1201 = vmatpush.msra.mxu1 %v1414_v18 }
  0x30   :  { %1328 = vmatpush.msra.mxu3 %v1415_v19 }
  0x31   :  { %1182 = vmatpush.msra.mxu0 %v1414_v18  ;;  %1202 = vmatpush.msra.mxu1 %v1414_v18 }
  0x33   :  { %1183 = vmatpush.msra.mxu0 %v1414_v18  ;;  %1203 = vmatpush.msra.mxu1 %v1414_v18 }
  0x34   :  { %1269 = vmatmul.f32.vlgmr.msrb.gmra.mxu2 %v1161_v22 }
  0x35   :  { %1184 = vmatpush.msra.mxu0 %v1414_v18  ;;  %1204 = vmatpush.msra.mxu1 %v1414_v18 }
  0x36   :  { %1289 = vmatmul.f32.vlgmr.msrb.gmra.mxu3 %v1162_v23 }
  0x37   :  { %1185 = vmatpush.msra.mxu0 %v1414_v18  ;;  %1205 = vmatpush.msra.mxu1 %v1414_v18 }
  0x39   :  { %1186 = vmatpush.msra.mxu0 %v1414_v18  ;;  %1206 = vmatpush.msra.mxu1 %v1414_v18 }
  0x3b   :  { %1187 = vmatpush.msra.mxu0 %v1414_v18  ;;  %1207 = vmatpush.msra.mxu1 %v1414_v18 }
  0x3c   :  { %1309 = vmatmul.f32.vlgmr.msra.gmra.mxu2 %v1163_v26 }
  0x3d   :  { %1188 = vmatpush.msra.mxu0 %v1414_v18  ;;  %1208 = vmatpush.msra.mxu1 %v1414_v18 }
  0x3e   :  { %1189 = vmatmul.f32.vlgmr.msra.gmra.mxu0 %v1157_v24  ;;  %1209 = vmatmul.f32.vlgmr.msra.gmra.mxu1 %v1158_v25 }
  0x3f   :  { %1329 = vmatmul.f32.vlgmr.msra.gmra.mxu3 %v1164_v27 }
  0x97   :  { %v100_v28 = vpop.f32.mrf.mxu0  ;;  %v120_v29 = vpop.f32.mrf.mxu1 }
  0x98   :  { %v121_v30 = vadd.f32 %v120_v29, %v100_v28 }
  0x9f   :  { %v140_v31 = vpop.f32.mrf.mxu2  ;;  %v160_v33 = vpop.f32.mrf.mxu3 }
  0xa0   :  { %v141_v32 = vadd.f32 %v140_v31, %v121_v30 }
  0xa1   :  { %v200_v36 = vpop.f32.mrf.mxu1 }
  0xa2   :  { %v161_v34 = vadd.f32 %v160_v33, %v141_v32 }
  0xa3   :  { %v180_v35 = vpop.f32.mrf.mxu0 }
  0xa4   :  { %v181_v37 = vadd.f32 %v180_v35, %v161_v34 }
  0xa6   :  { %v201_v38 = vadd.f32 %v200_v36, %v181_v37 }
  0xa7   :  { %v220_v39 = vpop.f32.mrf.mxu2 }
  0xa8   :  { %v221_v40 = vadd.f32 %v220_v39, %v201_v38 }
  0xa9   :  { %v240_v42 = vpop.f32.mrf.mxu3 }
  0xaa   :  { %v241_v43 = vadd.f32 %v240_v42, %v221_v40 }
  0xac   :  { %v243_v44 = vadd.f32 %v241_v43, %v42_v41 }
  0xae   :  { %245 = vst.msk [vmem:[#allocation5] sm:$0x3] %vm36_vm0, %v243_v44 }
  0xaf   :  { %v1230_v45 = vpop.f32.mrf.mxu2  ;;  %1346 = dma.vmem_to_hbm [thread:$0]  %s1342_s16, 32, %s1344_s19, [#allocation4]  }
  0xb1   :  { %v1250_v46 = vpop.f32.mrf.mxu3 }
  0xb7   :  { %v1270_v47 = vpop.f32.mrf.mxu2 }
  0xb9   :  { %v1290_v50 = vpop.f32.mrf.mxu3 }
  0xbb   :  { %v1190_v48 = vpop.f32.mrf.mxu0  ;;  %v1210_v49 = vpop.f32.mrf.mxu1 }
  0xbc   :  { %v1211_v51 = vadd.f32 %v1210_v49, %v1190_v48 }
  0xbe   :  { %v1231_v52 = vadd.f32 %v1230_v45, %v1211_v51 }
  0xbf   :  { %v1310_v55 = vpop.f32.mrf.mxu2 }
  0xc0   :  { %v1251_v53 = vadd.f32 %v1250_v46, %v1231_v52 }
  0xc2   :  { %v1271_v54 = vadd.f32 %v1270_v47, %v1251_v53  ;;  %v1330_v57 = vpop.f32.mrf.mxu3 }
  0xc4   :  { %v1291_v56 = vadd.f32 %v1290_v50, %v1271_v54 }
  0xc6   :  { %v1311_v58 = vadd.f32 %v1310_v55, %v1291_v56 }
  0xc8   :  { %v1331_v60 = vadd.f32 %v1330_v57, %v1311_v58 }
  0xca   :  { %v1333_v61 = vadd.f32 %v1331_v60, %v1153_v59 }
  0xcc   :  { %1335 = vst.msk [vmem:[%s1461_s2] sm:$0x3] %vm38_vm1, %v1333_v61 }
  0xcd   :  { %1411 = dma.done.wait [#allocation4], 32  }
  0xce   :  { %1412 = vsyncadd [#allocation4], 4294967264 }
  0xcf   :  { %1355 = vsyncpa [#allocation3], 1 }
  0xd0   :  { %1356 = vsyncpa [#allocation4], 1 }

</bundles_post_ra>
